<compile_context>
chip_gen: v7x
topology: tpu7x:2x2x1
jax: 0.10.0
libtpu: 0.0.40
codegen_flags: <defaults>
</compile_context>

<pallas_src>
import functools
import math

import jax
import jax.numpy as jnp
from jax.experimental import pallas as pl
from jax.experimental.pallas import tpu as pltpu


# ----------------------------- model config ---------------------------------
EMB_DIM = 32          # config.emb_dim
HIDDEN_DIM = 128      # config.hidden_dim (128 keeps fused slices lane-aligned)
BATCH = 2
SEQ = 8


# ------------------------------- Pallas kernel -------------------------------
def _ffn_kernel(x_ref, w12_ref, w3_ref, out_ref, *, hidden_dim):
    # x_ref:   (tile_m, emb)            current token block
    # w12_ref: (emb, 2*hidden) = [W1.T | W2.T]   (VMEM-resident across steps)
    # w3_ref:  (hidden, emb)                     (VMEM-resident across steps)
    x = x_ref[...]

    # Fused fc1|fc2 up-projection: one MXU matmul instead of two.
    h = jnp.dot(x, w12_ref[...], preferred_element_type=jnp.float32)  # (tm, 2*hidden)
    h1 = h[:, :hidden_dim]        # fc1(x) (gate)  -- lane-aligned slice
    h2 = h[:, hidden_dim:]        # fc2(x) (value) -- lane-aligned slice

    # silu(h1) * h2 ; sigmoid goes to the EUP, multiplies to the VPU.
    gated = h1 * jax.nn.sigmoid(h1) * h2

    # Down-projection; single full-width store of the output block.
    out_ref[...] = jnp.dot(
        gated, w3_ref[...], preferred_element_type=jnp.float32
    ).astype(out_ref.dtype)


# ------------------------------- wrapper -------------------------------------
@functools.partial(jax.jit, static_argnames=("tile_m",))
def feed_forward(x, w12, w3, *, tile_m=256):
    """x: (B, T, emb); w12: (emb, 2*hidden) prefused [W1.T|W2.T]; w3: (hidden, emb)."""
    b, t, emb = x.shape
    hidden = w3.shape[0]
    n = b * t
    x2d = x.reshape(n, emb)

    # Pick an M tile: sublane-aligned (multiple of 8), clamped to the data size.
    tm = min(tile_m, pl.cdiv(n, 8) * 8)
    n_pad = pl.cdiv(n, tm) * tm
    if n_pad != n:
        x2d = jnp.pad(x2d, ((0, n_pad - n), (0, 0)))

    kernel = functools.partial(_ffn_kernel, hidden_dim=hidden)

    out2d = pl.pallas_call(
        kernel,
        out_shape=jax.ShapeDtypeStruct((n_pad, emb), x.dtype),
        grid=(n_pad // tm,),
        in_specs=[
            pl.BlockSpec((tm, emb), lambda i: (i, 0)),            # x: tiled over M
            pl.BlockSpec((emb, 2 * hidden), lambda i: (0, 0)),    # w12: resident
            pl.BlockSpec((hidden, emb), lambda i: (0, 0)),        # w3: resident
        ],
        out_specs=pl.BlockSpec((tm, emb), lambda i: (i, 0)),
        compiler_params=pltpu.CompilerParams(
            dimension_semantics=("parallel",)),                   # megacore on v7x
    )(x2d, w12, w3)

    return out2d[:n].reshape(b, t, emb)


# --------------------------- pure-JAX reference ------------------------------
def reference(x, w1_t, w2_t, w3_t):
    h1 = x @ w1_t                      # fc1(x)
    h2 = x @ w2_t                      # fc2(x)
    return (jax.nn.silu(h1) * h2) @ w3_t


# --------------------------------- main --------------------------------------
if __name__ == "__main__":
    key = jax.random.PRNGKey(0)
    kx, k1, k2, k3 = jax.random.split(key, 4)

    x = jax.random.normal(kx, (BATCH, SEQ, EMB_DIM), dtype=jnp.float32)

    # Deterministic weight init (nn.Linear weight is (out, in); we store W.T).
    def init_w(k, fan_in, fan_out):
        bound = 1.0 / math.sqrt(fan_in)
        return jax.random.uniform(k, (fan_in, fan_out), jnp.float32,
                                  minval=-bound, maxval=bound)

    w1_t = init_w(k1, EMB_DIM, HIDDEN_DIM)    # fc1.weight.T
    w2_t = init_w(k2, EMB_DIM, HIDDEN_DIM)    # fc2.weight.T
    w3_t = init_w(k3, HIDDEN_DIM, EMB_DIM)    # fc3.weight.T

    # Prefuse the up-projection weights ONCE at init (not per forward call).
    w12 = jnp.concatenate([w1_t, w2_t], axis=1)   # (emb, 2*hidden)

    # tile_m=8 at this toy size -> 2 grid steps, exercising the tiled/pipelined
    # path; real deployments would use the default 256 (halve on v7x).
    out = feed_forward(x, w12, w3_t, tile_m=8)
    out = jax.block_until_ready(out)

    ref = reference(x, w1_t, w2_t, w3_t)
    assert out.shape == (BATCH, SEQ, EMB_DIM)
    assert jnp.allclose(out, ref, atol=1e-4, rtol=1e-4), \
        f"max abs err {jnp.max(jnp.abs(out - ref))}"

    print("KERNEL_OK")
</pallas_src>

<mosaic_0001>
module attributes {stable_mosaic.version = 11 : i64} {
  func.func @_ffn_kernel(%arg0: i32, %arg1: memref<8x32xf32, #tpu.memory_space<vmem>>, %arg2: memref<32x256xf32, #tpu.memory_space<vmem>>, %arg3: memref<128x32xf32, #tpu.memory_space<vmem>>, %arg4: memref<8x32xf32, #tpu.memory_space<vmem>>) attributes {dimension_semantics = [#tpu.dimension_semantics<parallel>], iteration_bounds = array<i64: 2>, scalar_prefetch = 0 : i64, scratch_operands = 0 : i64, tpu.core_type = #tpu.core_type<tc>, window_params = [{transform_indices = @transform_0, window_bounds = array<i64: 8, 32>}, {pipeline_mode = #tpu.pipeline_mode<synchronous>, transform_indices = @transform_1, window_bounds = array<i64: 32, 256>}, {pipeline_mode = #tpu.pipeline_mode<synchronous>, transform_indices = @transform_2, window_bounds = array<i64: 128, 32>}, {transform_indices = @transform_3, window_bounds = array<i64: 8, 32>}]} {
    %c0 = arith.constant 0 : index
    %c0_0 = arith.constant 0 : index
    %0 = vector.load %arg1[%c0, %c0_0] : memref<8x32xf32, #tpu.memory_space<vmem>>, vector<8x32xf32>
    %c0_1 = arith.constant 0 : index
    %c0_2 = arith.constant 0 : index
    %1 = vector.load %arg2[%c0_1, %c0_2] : memref<32x256xf32, #tpu.memory_space<vmem>>, vector<32x256xf32>
    %cst = arith.constant dense<0.000000e+00> : vector<8x256xf32>
    %2 = tpu.matmul %0, %1, %cst {dimension_numbers = #tpu.dot_dimension_numbers<[1], [0], [0], [1], [0, 0, 1, 1], [], []>} : vector<8x32xf32>, vector<32x256xf32>, vector<8x256xf32> -> vector<8x256xf32>
    %3 = vector.extract_strided_slice %2 {offsets = [0, 0], sizes = [8, 128], strides = [1, 1]} : vector<8x256xf32> to vector<8x128xf32>
    %4 = vector.extract_strided_slice %2 {offsets = [0, 128], sizes = [8, 128], strides = [1, 1]} : vector<8x256xf32> to vector<8x128xf32>
    %5 = arith.negf %3 : vector<8x128xf32>
    %6 = math.exp %5 : vector<8x128xf32>
    %cst_3 = arith.constant 1.000000e+00 : f32
    %7 = vector.broadcast %cst_3 : f32 to vector<8x128xf32>
    %8 = arith.addf %7, %6 : vector<8x128xf32>
    %9 = arith.divf %7, %8 : vector<8x128xf32>
    %10 = arith.mulf %3, %9 : vector<8x128xf32>
    %11 = arith.mulf %10, %4 : vector<8x128xf32>
    %c0_4 = arith.constant 0 : index
    %c0_5 = arith.constant 0 : index
    %12 = vector.load %arg3[%c0_4, %c0_5] : memref<128x32xf32, #tpu.memory_space<vmem>>, vector<128x32xf32>
    %cst_6 = arith.constant dense<0.000000e+00> : vector<8x32xf32>
    %13 = tpu.matmul %11, %12, %cst_6 {dimension_numbers = #tpu.dot_dimension_numbers<[1], [0], [0], [1], [0, 0, 1, 1], [], []>} : vector<8x128xf32>, vector<128x32xf32>, vector<8x32xf32> -> vector<8x32xf32>
    %c0_7 = arith.constant 0 : index
    %c0_8 = arith.constant 0 : index
    %14 = vector.load %arg4[%c0_7, %c0_8] : memref<8x32xf32, #tpu.memory_space<vmem>>, vector<8x32xf32>
    tpu.vector_store %arg4[%c0_7, %c0_8], %13 {strides = array<i32>} : memref<8x32xf32, #tpu.memory_space<vmem>>, vector<8x32xf32>,
    return
  }
  func.func @transform_0(%arg0: i32) -> (i32, i32) {
    %c0_i32 = arith.constant 0 : i32
    %c0_i32_0 = arith.constant 0 : i32
    return %arg0, %c0_i32 : i32, i32
  }
  func.func @transform_1(%arg0: i32) -> (i32, i32) {
    %c0_i32 = arith.constant 0 : i32
    %c0_i32_0 = arith.constant 0 : i32
    %c0_i32_1 = arith.constant 0 : i32
    return %c0_i32, %c0_i32_0 : i32, i32
  }
  func.func @transform_2(%arg0: i32) -> (i32, i32) {
    %c0_i32 = arith.constant 0 : i32
    %c0_i32_0 = arith.constant 0 : i32
    %c0_i32_1 = arith.constant 0 : i32
    return %c0_i32, %c0_i32_0 : i32, i32
  }
  func.func @transform_3(%arg0: i32) -> (i32, i32) {
    %c0_i32 = arith.constant 0 : i32
    %c0_i32_0 = arith.constant 0 : i32
    return %arg0, %c0_i32 : i32, i32
  }
}

</mosaic_0001>

<bundles_post_ra>
// kernel: feed_forward.1
= control target key start
LH: loop header
LB: loop body
LE: loop exit
PB: predicated region body
PF: predicated region fallthrough
CT: control target
= control target key end

     0   :  { %8 = vsyncpa [#allocation3], 0  ;;  %s822_s0 = inlined_call_operand.vmem [shape: f32[16,32], index: 0, kind: input, shape index: {}]   ;;  %s823_s1 = inlined_call_operand.vmem [shape: f32[32,256], index: 1, kind: input, shape index: {}]   ;;  %s824_s2 = inlined_call_operand.vmem [shape: f32[128,32], index: 2, kind: input, shape index: {}]   ;;  %s825_s3 = inlined_call_operand.hbm [shape: f32[16,32], index: 3, kind: output, shape index: {}]  }
   0x1   :  { %10 = vsyncpa [#allocation3 + $0x1], 0  ;;  %s648_s12 = smov 0   ;;  %s650_s13 = smov 0  }
   0x2   :  { %s652_s14 = smov 0   ;;  %s654_s15 = smov 0  }
   0x3 LB: > { %s669_s16 = sadd.s32 4294967295, %s622_s15   ;;  %s418_s17 = sadd.s32 4294967294, %s622_s15   ;;  %s622_s15 = sphi %s654_s15, %s831_s15   ;;  %s618_s14 = sphi %s652_s14, %s830_s14   ;;  %s614_s13 = sphi %s650_s13, %s829_s13   ;;  %s610_s12 = sphi %s648_s12, %s828_s12  }
   0x4   : > { %s673_s18 = sadd.s32 1, %s622_s15   ;;  %s91_s19 = sadd.s32 1, %s618_s14 }
   0x5   : > { %s88_s20 = ssub.s32 %s622_s15, %s673_s18  ;;  %p101_p0 = scmp.ne.s32.totalorder %s618_s14, %s614_s13 }
   0x6   : > { %p89_p1 = scmp.eq.s32.totalorder %s88_s20, 0  ;;  %p102_p2 = scmp.eq.s32.totalorder %s669_s16, 1 }
   0x7   : > { %p107_p3 = scmp.ne.s32.totalorder %s614_s13, %s610_s12  ;;  %p108_p4 = scmp.eq.s32.totalorder %s418_s17, 1 }
   0x8   : > { %s684_s21 = scalar_select %p89_p1, %s618_s14, %s91_s19  }
   0x9   : > { %p686_p5 = por %p102_p2, %p101_p0  ;;  %p690_p6 = por %p108_p4, %p107_p3 }
   0xa   : > { %p421_p7 = scmp.ge.s32.totalorder %s622_s15, 1  ;;  %p139_p8 = scmp.lt.s32.totalorder %s622_s15, 3 }
   0xc   : > { %p140_p9 = pnand %p421_p7, %p139_p8 }
   0xd   : > { %v168_v0 = vld [vmem:[%s823_s1 + $0x8] sm:$0xff] (!%p140_p9)  ;;  %v170_v1 = vld [vmem:[%s823_s1 + $0x18] sm:$0xff] (!%p140_p9)  ;;  %v167_v2 = vld [vmem:[%s823_s1] sm:$0xff] (!%p140_p9)  ;;  %p162_p10 = scmp.lt.s32.totalorder (!%p140_p9), %s669_s16, 1  ;;  %v624_v7 = vmov (!%p140_p9), 0.0   ;;  %v625_v12 = vmov (!%p140_p9), 0.0|0.0  }
   0xe   : > { %143 = sbr.rel (%p140_p9) target bundleno = 494 (0x1ee), region = 32  ;;  %v482_v3 = vpack.c.bf16 (!%p140_p9), %v170_v1, %v168_v0  ;;  %v169_v4 = vld [vmem:[%s823_s1 + $0x10] sm:$0xff] (!%p140_p9)  ;;  %v172_v5 = vld [vmem:[%s823_s1 + $0x28] sm:$0xff] (!%p140_p9)  ;;  %v174_v6 = vld [vmem:[%s823_s1 + $0x38] sm:$0xff] (!%p140_p9)  ;;  %243 = vmatprep.mubr.f32.mxu0 (!%p140_p9), %v624_v7  ;;  %490 = vmatprep.subr.bf16.mxu1 (!%p140_p9), %v625_v12  ;;  %vm175_vm0 = vcmask (!%p140_p9), 261120   ;;  %vm626_vm1 = vmmov (!%p140_p9), 0  }
   0xf   : > { %v484_v8 = vpack.c.bf16 (!%p140_p9), %v169_v4, %v167_v2  ;;  %v486_v9 = vpack.c.bf16 (!%p140_p9), %v174_v6, %v172_v5  ;;  %v171_v10 = vld [vmem:[%s823_s1 + $0x20] sm:$0xff] (!%p140_p9)  ;;  %v173_v11 = vld [vmem:[%s823_s1 + $0x30] sm:$0xff] (!%p140_p9)  ;;  %v259_v16 = vld [vmem:[%s824_s2 + $0x8] sm:$0xff] (!%p140_p9)  ;;  %479 = vmatprep.mubr.msk.f32.mxu1 (!%p140_p9), %vm626_vm1, %v624_v7  ;;  %s427_s25 = sshll.u32 (!%p140_p9), %s669_s16, 7 }
  0x10   : > { %483 = vmatprep.subr.bf16.mxu0 (!%p140_p9), %v482_v3  ;;  %v488_v13 = vpack.c.bf16 (!%p140_p9), %v173_v11, %v171_v10  ;;  %v258_v15 = vld [vmem:[%s824_s2] sm:$0xff] (!%p140_p9)  ;;  %v260_v18 = vld [vmem:[%s824_s2 + $0x10] sm:$0xff] (!%p140_p9)  ;;  %v261_v19 = vld [vmem:[%s824_s2 + $0x18] sm:$0xff] (!%p140_p9)  ;;  %s779_s30 = scalar_lea.hbm (!%p140_p9), %s825_s3, %s427_s25 }
  0x11   : > { %485 = vmatpush1.bf16.msra.mxu0 (!%p140_p9), %v484_v8  ;;  %v491_v17 = vpack.c.bf16 (!%p140_p9), %v259_v16, %v258_v15  ;;  %v494_v20 = vpack.c.bf16 (!%p140_p9), %v261_v19, %v260_v18  ;;  %v262_v21 = vld [vmem:[%s824_s2 + $0x20] sm:$0xff] (!%p140_p9)  ;;  %v263_v22 = vld [vmem:[%s824_s2 + $0x28] sm:$0xff] (!%p140_p9)  ;;  %v264_v24 = vld [vmem:[%s824_s2 + $0x30] sm:$0xff] (!%p140_p9) }
  0x12   : > { %487 = vmatprep.subr.bf16.mxu0 (!%p140_p9), %v486_v9  ;;  %v497_v23 = vpack.c.bf16 (!%p140_p9), %v263_v22, %v262_v21  ;;  %v265_v25 = vld [vmem:[%s824_s2 + $0x38] sm:$0xff] (!%p140_p9)  ;;  %v266_v27 = vld [vmem:[%s824_s2 + $0x40] sm:$0xff] (!%p140_p9)  ;;  %v267_v28 = vld [vmem:[%s824_s2 + $0x48] sm:$0xff] (!%p140_p9) }
  0x13   : > { %492 = vmatpush3.bf16.msra.mxu1 (!%p140_p9), %v491_v17  ;;  %v500_v26 = vpack.c.bf16 (!%p140_p9), %v265_v25, %v264_v24  ;;  %v503_v29 = vpack.c.bf16 (!%p140_p9), %v267_v28, %v266_v27  ;;  %v268_v30 = vld [vmem:[%s824_s2 + $0x50] sm:$0xff] (!%p140_p9)  ;;  %v269_v31 = vld [vmem:[%s824_s2 + $0x58] sm:$0xff] (!%p140_p9)  ;;  %v270_v33 = vld [vmem:[%s824_s2 + $0x60] sm:$0xff] (!%p140_p9) }
  0x14   : > { %493 = vmatprep.subr.bf16.mxu1 (!%p140_p9), %v625_v12  ;;  %v506_v32 = vpack.c.bf16 (!%p140_p9), %v269_v31, %v268_v30  ;;  %v271_v34 = vld [vmem:[%s824_s2 + $0x68] sm:$0xff] (!%p140_p9)  ;;  %v272_v36 = vld [vmem:[%s824_s2 + $0x70] sm:$0xff] (!%p140_p9)  ;;  %v273_v37 = vld [vmem:[%s824_s2 + $0x78] sm:$0xff] (!%p140_p9) }
  0x15   : > { %s163_s19 = scalar_select %p162_p10, %s669_s16, 1  ;;  %489 = vmatpush1.bf16.msra.mxu0 %v488_v13  ;;  %v509_v35 = vpack.c.bf16 %v271_v34, %v270_v33  ;;  %v512_v38 = vpack.c.bf16 %v273_v37, %v272_v36 }
  0x16   : > { %s627_s16 = smov [#allocation2]  }
  0x17   : > { %s423_s20 = sshll.u32 %s163_s19, 3  ;;  %495 = vmatpush3.bf16.msra.mxu1 %v494_v20  ;;  %s564_s6 = sshll.u32 %s627_s16, 4  ;;  %s565_s6 = int_to_ptr.vmem [resolvable:$false] %s564_s6 }
  0x18   : > { %s165_s26 = scalar_lea.vmem %s822_s0, %s423_s20  ;;  %496 = vmatprep.subr.bf16.mxu1 %v625_v12  ;;  %s159_s20 = sand.u32 1, %s614_s13  }
  0x19   : > { %v166_v14 = vld [vmem:[%s165_s26] sm:$0xff]  ;;  %s422_s24 = sshll.u32 %s159_s20, 3  ;;  %s346_s4 = scalar_lea.sflag [#allocation3], %s159_s20 }
  0x1a   : > { %424 = vmatmul.mubr.msk.f32.vlgmr.msra.gmra.mrb[0].mxu0 %vm175_vm0, %v166_v14  ;;  %s161_s26 = scalar_lea.vmem [#allocation2], %s422_s24  ;;  %s566_s7 = scalar_lea.vmem %s565_s6, 256 }
  0x1b   : > { %498 = vmatpush3.bf16.msra.mxu1 %v497_v23  ;;  %s359_s27 = sshll.u32 %s161_s26, 4  ;;  %s781_s27 = int_to_ptr.vmem [resolvable:$true] %s359_s27 }
  0x1c   : > { %499 = vmatprep.subr.bf16.mxu1 %v625_v12  ;;  %s560_s5 = scalar_lea.vmem %s781_s27, 128  ;;  %p567_p0 = scmp.lt.s32.totalorder %s781_s27, %s565_s6 }
  0x1d   : > { %p561_p11 = scmp.ne.s32.totalorder %s781_s27, %s560_s5  ;;  %p568_p1 = scmp.lt.s32.totalorder %s566_s7, %s560_s5 }
  0x1f   : > { %501 = vmatpush3.bf16.msra.mxu1 %v500_v26  ;;  %p562_p12 = pnand %p561_p11, %p686_p5  ;;  %p569_p2 = por %p568_p1, %p567_p0 }
  0x20   : > { %502 = vmatprep.subr.bf16.mxu1 %v625_v12 }
  0x21   : > { %p563_p13 = pneg %p562_p12 }
  0x23   : > { %504 = vmatpush3.bf16.msra.mxu1 %v503_v29  ;;  %p570_p3 = pnand %p569_p2, %p563_p13 }
  0x24   : > { %505 = vmatprep.subr.bf16.mxu1 %v625_v12 }
  0x27   : > { %507 = vmatpush3.bf16.msra.mxu1 %v506_v32 }
  0x28   : > { %508 = vmatprep.subr.bf16.mxu1 %v625_v12 }
  0x2b   : > { %510 = vmatpush3.bf16.msra.mxu1 %v509_v35 }
  0x2c   : > { %511 = vmatprep.subr.bf16.mxu1 %v625_v12 }
  0x2f   : > { %513 = vmatpush3.bf16.msra.mxu1 %v512_v38 }
  0xed   : > { %v245_v39 = vpop.f32.mrb[0].mxu0 }
  0xee   : > { %v425_v40 = vmul.f32 -1.442695, %v245_v39  ;;  %v247_v41 = vpop.f32.mrb[1].mxu0 }
  0xf0   : > { %556 = vpow2.f32 %v425_v40 }
  0xfa   : > { %v557_v42 = vpop.eup %556 }
  0xfb   : > { %v253_v43 = vadd.f32 1.0, %v557_v42 }
  0xfd   : > { %558 = vrcp.f32 %v253_v43 }
 0x107   : > { %v559_v44 = vpop.eup %558 }
 0x108   : > { %v256_v45 = vmul.f32 %v559_v44, %v245_v39 }
 0x10a   : > { %v257_v46 = vmul.f32 %v256_v45, %v247_v41 }
 0x10c   : > { %480 = vmatmul.mubr.f32.vlgmr.msra.gmra.mrb[0].mxu1 %v257_v46 }
 0x1df   : > { %v340_v47 = vpop.f32.mrb[0].mxu1 }
 0x1e0   : > { %344 = vst.msk [vmem:[%s161_s26] sm:$0xff] %vm175_vm0, %v340_v47  ;;  %v481_v48 = vpop.f32.mrb[1].mxu1 }
 0x1e1   : > { %573 = shalt.err (!%p570_p3)
}
 0x1e2   : > { %s574_s8 = scalar_lea.hbm %s779_s30, 128  ;;  %s578_s11 = scalar_lea.hbm %s825_s3, 256 }
 0x1e3   : > { %p575_p4 = scmp.ne.s32.totalorder %s779_s30, %s574_s8  ;;  %p579_p9 = scmp.lt.u32.totalorder %s779_s30, %s825_s3 }
 0x1e4   : > { %p580_p10 = scmp.lt.u32.totalorder %s578_s11, %s574_s8  ;;  %p582_p12 = scmp.lt.u32.totalorder %s574_s8, %s779_s30 }
 0x1e5   : > { %p576_p7 = pnand %p575_p4, %p686_p5 }
 0x1e6   : > { %p581_p11 = por %p580_p10, %p579_p9 }
 0x1e7   : > { %p577_p8 = pneg %p576_p7 }
 0x1e8   : > { %p583_p13 = por %p582_p12, %p581_p11 }
 0x1ea   : > { %p584_p0 = pnand %p583_p13, %p577_p8 }
 0x1ec   : > { %587 = shalt.err (!%p584_p0)
}
 0x1ed   : > { %514 = dma.vmem_to_hbm [thread:$0]  (%p686_p5), %s781_s27, 128, %s779_s30, %s346_s4  }
 0x1ee PF: > { %p520_p1 = scmp.ge.s32.totalorder %s622_s15, 2  ;;  %s371_s20 = sand.u32 1, %s610_s12  }
 0x1ef   : > { %s372_s24 = scalar_lea.sflag [#allocation3], %s371_s20 }
 0x1f0   : > { %p517_p2 = pnand %p520_p1, %p690_p6 }
 0x1f2   : > { %605 = dma.done.wait (!%p517_p2), %s372_s24, 128  }
 0x1f3   : > { %607 = vsyncadd (!%p517_p2), %s372_s24, 4294967168  ;;  %p13_p3 = scmp.ge.s32.totalorder %s673_s18, 4   ;;  %s828_s12 = smov %s614_s13 }
 0x1f4   : > { %s829_s13 = smov %s618_s14  ;;  %s830_s14 = smov %s684_s21 }
 0x1f5   : > { %s831_s15 = smov %s673_s18  ;;  %15 = sbr.rel (!%p13_p3) target bundleno = 3 (0x3), region = 67 }
 0x1fc   :  { %377 = vsyncpa [#allocation3], 1 }
 0x1fd   :  { %379 = vsyncpa [#allocation3 + $0x1], 1 }

</bundles_post_ra>
